<compile_context>
chip_gen: v7x
topology: tpu7x:2x2x1
jax: 0.10.0
libtpu: 0.0.40
codegen_flags: <defaults>
</compile_context>

<pallas_src>
import functools

import jax
import jax.numpy as jnp
import numpy as np
from jax.experimental import pallas as pl
from jax.experimental.pallas import tpu as pltpu


def _round_up(n, m):
    return ((n + m - 1) // m) * m


def _lstm_kernel(x_ref, wrec_ref, wout_ref, out_ref, *,
                 input_dim, d_pad, hidden_dim, h_pad, seq_len, batch,
                 output_dim):
    """Whole-sequence LSTM + final linear, single invocation.

    x_ref:    (T*B, D_in)            time-major flattened input
    wrec_ref: (D_pad + H_pad + 8, 4H) packed [w_ih ; w_hh ; (b_ih+b_hh)] rows,
                                      each section 8-sublane aligned
    wout_ref: (out_dim, H+1)          packed [linear weight | linear bias]
    out_ref:  (B, out_dim)
    """
    D = input_dim
    H = hidden_dim
    B = batch

    # One load of the packed recurrent weights; static, tile-aligned slices.
    wrec = wrec_ref[...]                                        # (D_pad+H_pad+8, 4H)
    w_ih = wrec[0:D, :]                                         # (D, 4H)
    w_hh = wrec[d_pad:d_pad + H, :]                             # (H, 4H)
    bias = wrec[d_pad + h_pad:d_pad + h_pad + 1, :]             # (1, 4H)

    # Input projections for ALL time steps, kept in vregs (no VMEM round trip).
    # Bias folded in here, off the recurrence critical path.
    xproj = jnp.dot(x_ref[...], w_ih,
                    preferred_element_type=jnp.float32) + bias  # (T*B, 4H)

    h = jnp.zeros((B, H), jnp.float32)
    c = jnp.zeros((B, H), jnp.float32)

    # Static unroll (T is small); every slice below is a static vreg select.
    for t in range(seq_len):
        # Only one MXU push (h @ W_hh) per step on the serial critical path.
        gates = xproj[t * B:(t + 1) * B, :] + jnp.dot(
            h, w_hh, preferred_element_type=jnp.float32)        # (B, 4H)

        # One sigmoid over the whole gates vreg (covers i, f, o lanes at once),
        # then static lane slices -> 3 EUP pushes/step instead of 5.
        sig = jax.nn.sigmoid(gates)                             # (B, 4H)
        i_g = sig[:, 0 * H:1 * H]
        f_g = sig[:, 1 * H:2 * H]
        o_g = sig[:, 3 * H:4 * H]
        g_g = jnp.tanh(gates[:, 2 * H:3 * H])

        c = f_g * c + i_g * g_g
        h = o_g * jnp.tanh(c)

    wout = wout_ref[...]                                        # (out, H+1)
    w_out = wout[:, :H]                                         # (out, H)
    b_out = wout[:, H:H + 1]                                    # (out, 1)
    if output_dim == 1:
        # VPU multiply + XLU lane reduction; avoids a tiny N=1 MXU matmul.
        y = jnp.sum(h * w_out, axis=-1, keepdims=True) + b_out  # (B,1)+(1,1)
    else:
        # h @ w_out.T  (contract over H)
        y = jax.lax.dot_general(
            h, w_out, (((1,), (1,)), ((), ())),
            preferred_element_type=jnp.float32) + b_out.T       # (B,out)+(1,out)
    out_ref[...] = y.astype(out_ref.dtype)


def lstm_model_forward(x, params, *, input_dim, hidden_dim, output_dim):
    """Pallas forward for LSTMModel with MULTI_STEP.ALL_AT_ONCE.

    x: (B, T, D_in) float32
    returns: (B, output_dim, 1) float32 (matches `linear(lstm(x)[:, -1]).unsqueeze(-1)`)
    """
    B, T, D_in = x.shape
    assert D_in == input_dim
    H = hidden_dim
    d_pad = _round_up(D_in, 8)
    h_pad = _round_up(H, 8)

    # Time-major, flattened: row t*B + b holds x[b, t, :].
    x2d = jnp.swapaxes(x, 0, 1).reshape(T * B, D_in).astype(jnp.float32)

    kernel = functools.partial(
        _lstm_kernel, input_dim=D_in, d_pad=d_pad, hidden_dim=H, h_pad=h_pad,
        seq_len=T, batch=B, output_dim=output_dim)

    w_rec = params["w_rec"]
    w_out = params["w_out"]

    flops = (2 * T * B * D_in * 4 * H          # input projection
             + 2 * T * B * H * 4 * H           # recurrent matmuls
             + 2 * B * H * output_dim)         # output head
    transcendentals = T * B * (4 * H + 2 * H)  # sigmoid(4H) + 2 tanh(H) per row
    bytes_accessed = 4 * (x2d.size + w_rec.size + w_out.size + B * output_dim)

    vmem = pltpu.MemorySpace.VMEM
    out = pl.pallas_call(
        kernel,
        out_shape=jax.ShapeDtypeStruct((B, output_dim), jnp.float32),
        in_specs=[pl.BlockSpec(memory_space=vmem)] * 3,
        out_specs=pl.BlockSpec(memory_space=vmem),
        cost_estimate=pl.CostEstimate(
            flops=flops, transcendentals=transcendentals,
            bytes_accessed=bytes_accessed),
    )(x2d, w_rec, w_out)

    return out[:, :, None]  # unsqueeze(-1) -> (B, output_dim, 1)


def init_params(key, input_dim, hidden_dim, output_dim):
    """Deterministic synthetic weights with PyTorch-like init, pre-packed.

    Packed layouts (sections 8-sublane aligned):
      w_rec: (D_pad + H_pad + 8, 4H)
             rows [0:D_in)              = w_ih   (transposed vs. PyTorch (4H,D_in))
             rows [D_pad:D_pad+H)       = w_hh   (transposed vs. PyTorch (4H,H))
             row  [D_pad+H_pad]         = b_ih + b_hh   (gate order i,f,g,o)
      w_out: (out, H+1)  columns [0:H) = nn.Linear weight, column H = bias.
    """
    k1, k2, k3, k4, k5, k6 = jax.random.split(key, 6)
    H = hidden_dim
    d_pad = _round_up(input_dim, 8)
    h_pad = _round_up(H, 8)
    scale = 1.0 / np.sqrt(hidden_dim)

    w_ih = jax.random.uniform(k1, (input_dim, 4 * H), jnp.float32, -scale, scale)
    w_hh = jax.random.uniform(k2, (H, 4 * H), jnp.float32, -scale, scale)
    b_ih = jax.random.uniform(k3, (4 * H,), jnp.float32, -scale, scale)
    b_hh = jax.random.uniform(k4, (4 * H,), jnp.float32, -scale, scale)
    w_out = jax.random.uniform(k5, (output_dim, H), jnp.float32, -scale, scale)
    b_out = jax.random.uniform(k6, (output_dim,), jnp.float32, -scale, scale)

    w_rec = jnp.zeros((d_pad + h_pad + 8, 4 * H), jnp.float32)
    w_rec = w_rec.at[:input_dim].set(w_ih)
    w_rec = w_rec.at[d_pad:d_pad + H].set(w_hh)
    w_rec = w_rec.at[d_pad + h_pad].set(b_ih + b_hh)

    w_out_packed = jnp.concatenate([w_out, b_out[:, None]], axis=1)  # (out, H+1)

    return {"w_rec": w_rec, "w_out": w_out_packed}


def reference_forward(x, params, *, input_dim, hidden_dim, output_dim):
    """Pure-JAX reference (lax.scan LSTM) for correctness check, unpacking the
    same packed parameter buffers the kernel consumes."""
    H = hidden_dim
    d_pad = _round_up(input_dim, 8)
    h_pad = _round_up(H, 8)
    w_rec, wout = params["w_rec"], params["w_out"]
    w_ih = w_rec[:input_dim]
    w_hh = w_rec[d_pad:d_pad + H]
    bias = w_rec[d_pad + h_pad]
    w_out = wout[:, :H]
    b_out = wout[:, H]
    B = x.shape[0]

    def step(carry, x_t):
        h, c = carry
        gates = x_t @ w_ih + h @ w_hh + bias
        i, f, g, o = jnp.split(gates, 4, axis=-1)
        c = jax.nn.sigmoid(f) * c + jax.nn.sigmoid(i) * jnp.tanh(g)
        h = jax.nn.sigmoid(o) * jnp.tanh(c)
        return (h, c), h

    init = (jnp.zeros((B, H), jnp.float32), jnp.zeros((B, H), jnp.float32))
    (h_last, _), _ = jax.lax.scan(step, init, jnp.swapaxes(x, 0, 1))
    y = h_last @ w_out.T + b_out[None, :]
    return y[:, :, None]


if __name__ == "__main__":
    # Shapes consistent with the module's forward:
    # x: (batch=2, seq=8, input_dim=4); hidden_dim=32; output_dim=1 (ALL_AT_ONCE default).
    B, T, D_in, H, OUT = 2, 8, 4, 32, 1

    key = jax.random.PRNGKey(0)
    kx, kp = jax.random.split(key)
    x = jax.random.normal(kx, (B, T, D_in), jnp.float32)
    params = init_params(kp, D_in, H, OUT)

    y = lstm_model_forward(x, params, input_dim=D_in, hidden_dim=H, output_dim=OUT)
    y = jax.block_until_ready(y)

    y_ref = jax.block_until_ready(
        reference_forward(x, params, input_dim=D_in, hidden_dim=H, output_dim=OUT))
    np.testing.assert_allclose(np.asarray(y), np.asarray(y_ref), rtol=1e-5, atol=1e-5)
    assert y.shape == (B, OUT, 1)

    print("KERNEL_OK")
</pallas_src>

<mosaic_0001>
module attributes {stable_mosaic.version = 11 : i64} {
  func.func @_lstm_kernel(%arg0: memref<16x4xf32, #tpu.memory_space<vmem>>, %arg1: memref<48x128xf32, #tpu.memory_space<vmem>>, %arg2: memref<1x33xf32, #tpu.memory_space<vmem>>, %arg3: memref<2x1xf32, #tpu.memory_space<vmem>>) attributes {dimension_semantics = [], scalar_prefetch = 0 : i64, scratch_operands = 0 : i64, tpu.core_type = #tpu.core_type<tc>} {
    %c0 = arith.constant 0 : index
    %c0_0 = arith.constant 0 : index
    %0 = vector.load %arg1[%c0, %c0_0] : memref<48x128xf32, #tpu.memory_space<vmem>>, vector<48x128xf32>
    %1 = vector.extract_strided_slice %0 {offsets = [0, 0], sizes = [4, 128], strides = [1, 1]} : vector<48x128xf32> to vector<4x128xf32>
    %2 = vector.extract_strided_slice %0 {offsets = [8, 0], sizes = [32, 128], strides = [1, 1]} : vector<48x128xf32> to vector<32x128xf32>
    %3 = vector.extract_strided_slice %0 {offsets = [40, 0], sizes = [1, 128], strides = [1, 1]} : vector<48x128xf32> to vector<1x128xf32>
    %c0_1 = arith.constant 0 : index
    %c0_2 = arith.constant 0 : index
    %4 = vector.load %arg0[%c0_1, %c0_2] : memref<16x4xf32, #tpu.memory_space<vmem>>, vector<16x4xf32>
    %cst = arith.constant dense<0.000000e+00> : vector<16x128xf32>
    %5 = tpu.matmul %4, %1, %cst {dimension_numbers = #tpu.dot_dimension_numbers<[1], [0], [0], [1], [0, 0, 1, 1], [], []>} : vector<16x4xf32>, vector<4x128xf32>, vector<16x128xf32> -> vector<16x128xf32>
    %6 = vector.broadcast %3 : vector<1x128xf32> to vector<16x128xf32>
    %7 = arith.addf %5, %6 : vector<16x128xf32>
    %cst_3 = arith.constant 0.000000e+00 : f32
    %8 = vector.broadcast %cst_3 : f32 to vector<2x32xf32>
    %cst_4 = arith.constant 0.000000e+00 : f32
    %9 = vector.broadcast %cst_4 : f32 to vector<2x32xf32>
    %10 = vector.extract_strided_slice %7 {offsets = [0, 0], sizes = [2, 128], strides = [1, 1]} : vector<16x128xf32> to vector<2x128xf32>
    %cst_5 = arith.constant dense<0.000000e+00> : vector<2x128xf32>
    %11 = tpu.matmul %8, %2, %cst_5 {dimension_numbers = #tpu.dot_dimension_numbers<[1], [0], [0], [1], [0, 0, 1, 1], [], []>} : vector<2x32xf32>, vector<32x128xf32>, vector<2x128xf32> -> vector<2x128xf32>
    %12 = arith.addf %10, %11 : vector<2x128xf32>
    %13 = arith.negf %12 : vector<2x128xf32>
    %14 = math.exp %13 : vector<2x128xf32>
    %cst_6 = arith.constant 1.000000e+00 : f32
    %15 = vector.broadcast %cst_6 : f32 to vector<2x128xf32>
    %16 = arith.addf %15, %14 : vector<2x128xf32>
    %17 = arith.divf %15, %16 : vector<2x128xf32>
    %18 = vector.extract_strided_slice %17 {offsets = [0, 0], sizes = [2, 32], strides = [1, 1]} : vector<2x128xf32> to vector<2x32xf32>
    %19 = vector.extract_strided_slice %17 {offsets = [0, 32], sizes = [2, 32], strides = [1, 1]} : vector<2x128xf32> to vector<2x32xf32>
    %20 = vector.extract_strided_slice %17 {offsets = [0, 96], sizes = [2, 32], strides = [1, 1]} : vector<2x128xf32> to vector<2x32xf32>
    %21 = vector.extract_strided_slice %12 {offsets = [0, 64], sizes = [2, 32], strides = [1, 1]} : vector<2x128xf32> to vector<2x32xf32>
    %22 = math.tanh %21 : vector<2x32xf32>
    %23 = arith.mulf %19, %9 : vector<2x32xf32>
    %24 = arith.mulf %18, %22 : vector<2x32xf32>
    %25 = arith.addf %23, %24 : vector<2x32xf32>
    %26 = math.tanh %25 : vector<2x32xf32>
    %27 = arith.mulf %20, %26 : vector<2x32xf32>
    %28 = vector.extract_strided_slice %7 {offsets = [2, 0], sizes = [2, 128], strides = [1, 1]} : vector<16x128xf32> to vector<2x128xf32>
    %cst_7 = arith.constant dense<0.000000e+00> : vector<2x128xf32>
    %29 = tpu.matmul %27, %2, %cst_7 {dimension_numbers = #tpu.dot_dimension_numbers<[1], [0], [0], [1], [0, 0, 1, 1], [], []>} : vector<2x32xf32>, vector<32x128xf32>, vector<2x128xf32> -> vector<2x128xf32>
    %30 = arith.addf %28, %29 : vector<2x128xf32>
    %31 = arith.negf %30 : vector<2x128xf32>
    %32 = math.exp %31 : vector<2x128xf32>
    %cst_8 = arith.constant 1.000000e+00 : f32
    %33 = vector.broadcast %cst_8 : f32 to vector<2x128xf32>
    %34 = arith.addf %33, %32 : vector<2x128xf32>
    %35 = arith.divf %33, %34 : vector<2x128xf32>
    %36 = vector.extract_strided_slice %35 {offsets = [0, 0], sizes = [2, 32], strides = [1, 1]} : vector<2x128xf32> to vector<2x32xf32>
    %37 = vector.extract_strided_slice %35 {offsets = [0, 32], sizes = [2, 32], strides = [1, 1]} : vector<2x128xf32> to vector<2x32xf32>
    %38 = vector.extract_strided_slice %35 {offsets = [0, 96], sizes = [2, 32], strides = [1, 1]} : vector<2x128xf32> to vector<2x32xf32>
    %39 = vector.extract_strided_slice %30 {offsets = [0, 64], sizes = [2, 32], strides = [1, 1]} : vector<2x128xf32> to vector<2x32xf32>
    %40 = math.tanh %39 : vector<2x32xf32>
    %41 = arith.mulf %37, %25 : vector<2x32xf32>
    %42 = arith.mulf %36, %40 : vector<2x32xf32>
    %43 = arith.addf %41, %42 : vector<2x32xf32>
    %44 = math.tanh %43 : vector<2x32xf32>
    %45 = arith.mulf %38, %44 : vector<2x32xf32>
    %46 = vector.extract_strided_slice %7 {offsets = [4, 0], sizes = [2, 128], strides = [1, 1]} : vector<16x128xf32> to vector<2x128xf32>
    %cst_9 = arith.constant dense<0.000000e+00> : vector<2x128xf32>
    %47 = tpu.matmul %45, %2, %cst_9 {dimension_numbers = #tpu.dot_dimension_numbers<[1], [0], [0], [1], [0, 0, 1, 1], [], []>} : vector<2x32xf32>, vector<32x128xf32>, vector<2x128xf32> -> vector<2x128xf32>
    %48 = arith.addf %46, %47 : vector<2x128xf32>
    %49 = arith.negf %48 : vector<2x128xf32>
    %50 = math.exp %49 : vector<2x128xf32>
    %cst_10 = arith.constant 1.000000e+00 : f32
    %51 = vector.broadcast %cst_10 : f32 to vector<2x128xf32>
    %52 = arith.addf %51, %50 : vector<2x128xf32>
    %53 = arith.divf %51, %52 : vector<2x128xf32>
    %54 = vector.extract_strided_slice %53 {offsets = [0, 0], sizes = [2, 32], strides = [1, 1]} : vector<2x128xf32> to vector<2x32xf32>
    %55 = vector.extract_strided_slice %53 {offsets = [0, 32], sizes = [2, 32], strides = [1, 1]} : vector<2x128xf32> to vector<2x32xf32>
    %56 = vector.extract_strided_slice %53 {offsets = [0, 96], sizes = [2, 32], strides = [1, 1]} : vector<2x128xf32> to vector<2x32xf32>
    %57 = vector.extract_strided_slice %48 {offsets = [0, 64], sizes = [2, 32], strides = [1, 1]} : vector<2x128xf32> to vector<2x32xf32>
    %58 = math.tanh %57 : vector<2x32xf32>
    %59 = arith.mulf %55, %43 : vector<2x32xf32>
    %60 = arith.mulf %54, %58 : vector<2x32xf32>
    %61 = arith.addf %59, %60 : vector<2x32xf32>
    %62 = math.tanh %61 : vector<2x32xf32>
    %63 = arith.mulf %56, %62 : vector<2x32xf32>
    %64 = vector.extract_strided_slice %7 {offsets = [6, 0], sizes = [2, 128], strides = [1, 1]} : vector<16x128xf32> to vector<2x128xf32>
    %cst_11 = arith.constant dense<0.000000e+00> : vector<2x128xf32>
    %65 = tpu.matmul %63, %2, %cst_11 {dimension_numbers = #tpu.dot_dimension_numbers<[1], [0], [0], [1], [0, 0, 1, 1], [], []>} : vector<2x32xf32>, vector<32x128xf32>, vector<2x128xf32> -> vector<2x128xf32>
    %66 = arith.addf %64, %65 : vector<2x128xf32>
    %67 = arith.negf %66 : vector<2x128xf32>
    %68 = math.exp %67 : vector<2x128xf32>
    %cst_12 = arith.constant 1.000000e+00 : f32
    %69 = vector.broadcast %cst_12 : f32 to vector<2x128xf32>
    %70 = arith.addf %69, %68 : vector<2x128xf32>
    %71 = arith.divf %69, %70 : vector<2x128xf32>
    %72 = vector.extract_strided_slice %71 {offsets = [0, 0], sizes = [2, 32], strides = [1, 1]} : vector<2x128xf32> to vector<2x32xf32>
    %73 = vector.extract_strided_slice %71 {offsets = [0, 32], sizes = [2, 32], strides = [1, 1]} : vector<2x128xf32> to vector<2x32xf32>
    %74 = vector.extract_strided_slice %71 {offsets = [0, 96], sizes = [2, 32], strides = [1, 1]} : vector<2x128xf32> to vector<2x32xf32>
    %75 = vector.extract_strided_slice %66 {offsets = [0, 64], sizes = [2, 32], strides = [1, 1]} : vector<2x128xf32> to vector<2x32xf32>
    %76 = math.tanh %75 : vector<2x32xf32>
    %77 = arith.mulf %73, %61 : vector<2x32xf32>
    %78 = arith.mulf %72, %76 : vector<2x32xf32>
    %79 = arith.addf %77, %78 : vector<2x32xf32>
    %80 = math.tanh %79 : vector<2x32xf32>
    %81 = arith.mulf %74, %80 : vector<2x32xf32>
    %82 = vector.extract_strided_slice %7 {offsets = [8, 0], sizes = [2, 128], strides = [1, 1]} : vector<16x128xf32> to vector<2x128xf32>
    %cst_13 = arith.constant dense<0.000000e+00> : vector<2x128xf32>
    %83 = tpu.matmul %81, %2, %cst_13 {dimension_numbers = #tpu.dot_dimension_numbers<[1], [0], [0], [1], [0, 0, 1, 1], [], []>} : vector<2x32xf32>, vector<32x128xf32>, vector<2x128xf32> -> vector<2x128xf32>
    %84 = arith.addf %82, %83 : vector<2x128xf32>
    %85 = arith.negf %84 : vector<2x128xf32>
    %86 = math.exp %85 : vector<2x128xf32>
    %cst_14 = arith.constant 1.000000e+00 : f32
    %87 = vector.broadcast %cst_14 : f32 to vector<2x128xf32>
    %88 = arith.addf %87, %86 : vector<2x128xf32>
    %89 = arith.divf %87, %88 : vector<2x128xf32>
    %90 = vector.extract_strided_slice %89 {offsets = [0, 0], sizes = [2, 32], strides = [1, 1]} : vector<2x128xf32> to vector<2x32xf32>
    %91 = vector.extract_strided_slice %89 {offsets = [0, 32], sizes = [2, 32], strides = [1, 1]} : vector<2x128xf32> to vector<2x32xf32>
    %92 = vector.extract_strided_slice %89 {offsets = [0, 96], sizes = [2, 32], strides = [1, 1]} : vector<2x128xf32> to vector<2x32xf32>
    %93 = vector.extract_strided_slice %84 {offsets = [0, 64], sizes = [2, 32], strides = [1, 1]} : vector<2x128xf32> to vector<2x32xf32>
    %94 = math.tanh %93 : vector<2x32xf32>
    %95 = arith.mulf %91, %79 : vector<2x32xf32>
    %96 = arith.mulf %90, %94 : vector<2x32xf32>
    %97 = arith.addf %95, %96 : vector<2x32xf32>
    %98 = math.tanh %97 : vector<2x32xf32>
    %99 = arith.mulf %92, %98 : vector<2x32xf32>
    %100 = vector.extract_strided_slice %7 {offsets = [10, 0], sizes = [2, 128], strides = [1, 1]} : vector<16x128xf32> to vector<2x128xf32>
    %cst_15 = arith.constant dense<0.000000e+00> : vector<2x128xf32>
    %101 = tpu.matmul %99, %2, %cst_15 {dimension_numbers = #tpu.dot_dimension_numbers<[1], [0], [0], [1], [0, 0, 1, 1], [], []>} : vector<2x32xf32>, vector<32x128xf32>, vector<2x128xf32> -> vector<2x128xf32>
    %102 = arith.addf %100, %101 : vector<2x128xf32>
    %103 = arith.negf %102 : vector<2x128xf32>
    %104 = math.exp %103 : vector<2x128xf32>
    %cst_16 = arith.constant 1.000000e+00 : f32
    %105 = vector.broadcast %cst_16 : f32 to vector<2x128xf32>
    %106 = arith.addf %105, %104 : vector<2x128xf32>
    %107 = arith.divf %105, %106 : vector<2x128xf32>
    %108 = vector.extract_strided_slice %107 {offsets = [0, 0], sizes = [2, 32], strides = [1, 1]} : vector<2x128xf32> to vector<2x32xf32>
    %109 = vector.extract_strided_slice %107 {offsets = [0, 32], sizes = [2, 32], strides = [1, 1]} : vector<2x128xf32> to vector<2x32xf32>
    %110 = vector.extract_strided_slice %107 {offsets = [0, 96], sizes = [2, 32], strides = [1, 1]} : vector<2x128xf32> to vector<2x32xf32>
    %111 = vector.extract_strided_slice %102 {offsets = [0, 64], sizes = [2, 32], strides = [1, 1]} : vector<2x128xf32> to vector<2x32xf32>
    %112 = math.tanh %111 : vector<2x32xf32>
    %113 = arith.mulf %109, %97 : vector<2x32xf32>
    %114 = arith.mulf %108, %112 : vector<2x32xf32>
    %115 = arith.addf %113, %114 : vector<2x32xf32>
    %116 = math.tanh %115 : vector<2x32xf32>
    %117 = arith.mulf %110, %116 : vector<2x32xf32>
    %118 = vector.extract_strided_slice %7 {offsets = [12, 0], sizes = [2, 128], strides = [1, 1]} : vector<16x128xf32> to vector<2x128xf32>
    %cst_17 = arith.constant dense<0.000000e+00> : vector<2x128xf32>
    %119 = tpu.matmul %117, %2, %cst_17 {dimension_numbers = #tpu.dot_dimension_numbers<[1], [0], [0], [1], [0, 0, 1, 1], [], []>} : vector<2x32xf32>, vector<32x128xf32>, vector<2x128xf32> -> vector<2x128xf32>
    %120 = arith.addf %118, %119 : vector<2x128xf32>
    %121 = arith.negf %120 : vector<2x128xf32>
    %122 = math.exp %121 : vector<2x128xf32>
    %cst_18 = arith.constant 1.000000e+00 : f32
    %123 = vector.broadcast %cst_18 : f32 to vector<2x128xf32>
    %124 = arith.addf %123, %122 : vector<2x128xf32>
    %125 = arith.divf %123, %124 : vector<2x128xf32>
    %126 = vector.extract_strided_slice %125 {offsets = [0, 0], sizes = [2, 32], strides = [1, 1]} : vector<2x128xf32> to vector<2x32xf32>
    %127 = vector.extract_strided_slice %125 {offsets = [0, 32], sizes = [2, 32], strides = [1, 1]} : vector<2x128xf32> to vector<2x32xf32>
    %128 = vector.extract_strided_slice %125 {offsets = [0, 96], sizes = [2, 32], strides = [1, 1]} : vector<2x128xf32> to vector<2x32xf32>
    %129 = vector.extract_strided_slice %120 {offsets = [0, 64], sizes = [2, 32], strides = [1, 1]} : vector<2x128xf32> to vector<2x32xf32>
    %130 = math.tanh %129 : vector<2x32xf32>
    %131 = arith.mulf %127, %115 : vector<2x32xf32>
    %132 = arith.mulf %126, %130 : vector<2x32xf32>
    %133 = arith.addf %131, %132 : vector<2x32xf32>
    %134 = math.tanh %133 : vector<2x32xf32>
    %135 = arith.mulf %128, %134 : vector<2x32xf32>
    %136 = vector.extract_strided_slice %7 {offsets = [14, 0], sizes = [2, 128], strides = [1, 1]} : vector<16x128xf32> to vector<2x128xf32>
    %cst_19 = arith.constant dense<0.000000e+00> : vector<2x128xf32>
    %137 = tpu.matmul %135, %2, %cst_19 {dimension_numbers = #tpu.dot_dimension_numbers<[1], [0], [0], [1], [0, 0, 1, 1], [], []>} : vector<2x32xf32>, vector<32x128xf32>, vector<2x128xf32> -> vector<2x128xf32>
    %138 = arith.addf %136, %137 : vector<2x128xf32>
    %139 = arith.negf %138 : vector<2x128xf32>
    %140 = math.exp %139 : vector<2x128xf32>
    %cst_20 = arith.constant 1.000000e+00 : f32
    %141 = vector.broadcast %cst_20 : f32 to vector<2x128xf32>
    %142 = arith.addf %141, %140 : vector<2x128xf32>
    %143 = arith.divf %141, %142 : vector<2x128xf32>
    %144 = vector.extract_strided_slice %143 {offsets = [0, 0], sizes = [2, 32], strides = [1, 1]} : vector<2x128xf32> to vector<2x32xf32>
    %145 = vector.extract_strided_slice %143 {offsets = [0, 32], sizes = [2, 32], strides = [1, 1]} : vector<2x128xf32> to vector<2x32xf32>
    %146 = vector.extract_strided_slice %143 {offsets = [0, 96], sizes = [2, 32], strides = [1, 1]} : vector<2x128xf32> to vector<2x32xf32>
    %147 = vector.extract_strided_slice %138 {offsets = [0, 64], sizes = [2, 32], strides = [1, 1]} : vector<2x128xf32> to vector<2x32xf32>
    %148 = math.tanh %147 : vector<2x32xf32>
    %149 = arith.mulf %145, %133 : vector<2x32xf32>
    %150 = arith.mulf %144, %148 : vector<2x32xf32>
    %151 = arith.addf %149, %150 : vector<2x32xf32>
    %152 = math.tanh %151 : vector<2x32xf32>
    %153 = arith.mulf %146, %152 : vector<2x32xf32>
    %c0_21 = arith.constant 0 : index
    %c0_22 = arith.constant 0 : index
    %154 = vector.load %arg2[%c0_21, %c0_22] : memref<1x33xf32, #tpu.memory_space<vmem>>, vector<1x33xf32>
    %155 = vector.extract_strided_slice %154 {offsets = [0, 0], sizes = [1, 32], strides = [1, 1]} : vector<1x33xf32> to vector<1x32xf32>
    %156 = vector.extract_strided_slice %154 {offsets = [0, 32], sizes = [1, 1], strides = [1, 1]} : vector<1x33xf32> to vector<1x1xf32>
    %157 = vector.broadcast %155 : vector<1x32xf32> to vector<2x32xf32>
    %158 = arith.mulf %153, %157 : vector<2x32xf32>
    %cst_23 = arith.constant dense<0.000000e+00> : vector<2xf32>
    %159 = vector.multi_reduction <add>, %158, %cst_23 [1] : vector<2x32xf32> to vector<2xf32>
    %160 = vector.shape_cast %159 : vector<2xf32> to vector<2x1xf32>
    %161 = vector.broadcast %156 : vector<1x1xf32> to vector<2x1xf32>
    %162 = arith.addf %160, %161 : vector<2x1xf32>
    %c0_24 = arith.constant 0 : index
    %c0_25 = arith.constant 0 : index
    %163 = vector.load %arg3[%c0_24, %c0_25] : memref<2x1xf32, #tpu.memory_space<vmem>>, vector<2x1xf32>
    tpu.vector_store %arg3[%c0_24, %c0_25], %162 {strides = array<i32>} : memref<2x1xf32, #tpu.memory_space<vmem>>, vector<2x1xf32>,
    return
  }
}

</mosaic_0001>

<bundles_post_ra>
// kernel: tpu_custom_call.1
= control target key start
LH: loop header
LB: loop body
LE: loop exit
PB: predicated region body
PF: predicated region fallthrough
CT: control target
= control target key end

     0   :  { %8 = vsyncpa [#allocation3], 0  ;;  %s1300_s12 = smov [#allocation2]   ;;  %s1457_s0 = inlined_call_operand.vmem [shape: f32[16,4], index: 0, kind: input, shape index: {}]   ;;  %s1458_s1 = inlined_call_operand.hbm [shape: f32[48,128], index: 1, kind: input, shape index: {}]   ;;  %s1459_s2 = inlined_call_operand.vmem [shape: f32[1,33], index: 2, kind: input, shape index: {}]   ;;  %s1460_s3 = inlined_call_operand.vmem [shape: f32[2,1], index: 3, kind: output, shape index: {}]  }
   0x1   :  { %s16_s13 = sshll.u32 %s1300_s12, 4  ;;  %s1276_s16 = scalar_lea.hbm %s1458_s1, 768  ;;  %s17_s13 = int_to_ptr.vmem [resolvable:$true] %s16_s13 }
   0x2   :  { %p1277_p0 = scmp.ne.s32.totalorder %s1458_s1, %s1276_s16  ;;  %p1280_p1 = scmp.lt.u32.totalorder %s1276_s16, %s1458_s1 }
   0x4   :  { %p1282_p2 = pnand %p1280_p1, %p1277_p0 }
   0x6   :  { %1285 = shalt.err (!%p1282_p2)
}
   0x7   :  { %s1286_s21 = scalar_lea.vmem %s17_s13, 768  ;;  %p1291_p4 = scmp.lt.s32.totalorder %s17_s13, %s17_s13 }
   0x8   :  { %p1287_p3 = scmp.ne.s32.totalorder %s17_s13, %s1286_s21  ;;  %p1292_p5 = scmp.lt.s32.totalorder %s1286_s21, %s1286_s21 }
   0xa   :  { %p1293_p6 = por %p1292_p5, %p1291_p4 }
   0xc   :  { %p1294_p7 = pnand %p1293_p6, %p1287_p3 }
   0xe   :  { %1297 = shalt.err (!%p1294_p7)
}
   0xf   :  { %s1301_s22 = smov 128   ;;  %s1302_s23 = smov 8  }
  0x10   :  { %22 = dma.hbm_to_vmem [thread:$0]  %s1458_s1, 768, %s17_s13, [#allocation3], %s1301_s22, %s1301_s22, %s1302_s23  }
  0x11   :  { %1298 = dma.done.wait [#allocation3], 768  }
  0x12   :  { %1299 = vsyncadd [#allocation3], 4294966528  ;;  %v1303_v0 = vmov 0.0|0.0   ;;  %vm1304_vm0 = vmmov 0   ;;  %v1305_v1 = vmov 0.0   ;;  %vm47_vm1 = vcmask 1043456  }
  0x13   :  { %1155 = vmatprep.subr.bf16.mxu1 %v1303_v0  ;;  %1075 = vmatprep.mubr.msk.f32.mxu1 %vm1304_vm0, %v1305_v1  ;;  %vm40_vm2 = vcmask 31744   ;;  %v29_v2 = vld [vmem:[#allocation2 + $0x8] sm:$0xff]  ;;  %v30_v3 = vld [vmem:[#allocation2 + $0x10] sm:$0xff]  ;;  %v28_v4 = vld [vmem:[#allocation2] sm:$0xff]  ;;  %v36_v11 = vlaneseq  ;;  %s1307_s29 = smov 32   ;;  %vm126_vm3 = vcmask 261120  }
  0x14   :  { %v1344_v5 = vpack.c.bf16 %v30_v3, %v29_v2  ;;  %1062 = vmatprep.subr.msk.mxu0 %vm47_vm1, %v28_v4  ;;  %v34_v6 = vld [vmem:[%s1457_s0] sm:$0xff]  ;;  %v35_v7 = vld [vmem:[%s1457_s0 + $0x8] sm:$0xff]  ;;  %v31_v8 = vld [vmem:[#allocation2 + $0x18] sm:$0xff]  ;;  %s1306_s0 = smov 64   ;;  %s1308_s5 = smov 96   ;;  %vm983_vm4 = vcmask 261126  }
  0x15   :  { %1063 = vmatpush3.msk.msra.mxu0 %vm47_vm1, %v28_v4  ;;  %1064 = vmatprep.mubr.msk.f32.mxu0 %vm40_vm2, %v34_v6  ;;  %v32_v9 = vld [vmem:[#allocation2 + $0x20] sm:$0xff]  ;;  %v37_v12 = vshrl.u32 %v36_v11, 7  ;;  %v33_v14 = vld [vmem:[#allocation2 + $0x28] sm:$0xff]  ;;  %vm993_vm5 = vcmask 7174  }
  0x16   :  { %1157 = vmatpush3.bf16.msra.mxu1 %v1344_v5  ;;  %1065 = vmatmul.mubr.msk.f32.vlgmr.msra.gmra.mrb[0].mxu0 %vm40_vm2, %v35_v7  ;;  %v1353_v10 = vpack.c.bf16 %v32_v9, %v31_v8 }
  0x17   :  { %1158 = vmatprep.subr.bf16.mxu1 %v1303_v0  ;;  %1161 = vmatprep.subr.bf16.mxu0 %v1303_v0  ;;  %v38_v13 = vsub.s32 0, %v37_v12 }
  0x18   :  { %1163 = vmatpush3.bf16.msra.mxu0 %v1344_v5  ;;  %1086 = vmatprep.mubr.msk.f32.mxu0 %vm1304_vm0, %v1305_v1 }
  0x19   :  { %1164 = vmatprep.subr.bf16.mxu0 %v1303_v0  ;;  %v39_v15 = vrot.slane %v33_v14, %v38_v13 }
  0x1a   :  { %1160 = vmatpush3.bf16.msra.mxu1 %v1353_v10 }
  0x1b   :  { %1167 = vmatprep.subr.bf16.mxu1 %v1303_v0 }
  0x1c   :  { %1166 = vmatpush3.bf16.msra.mxu0 %v1353_v10 }
  0x1d   :  { %1076 = vmatmul.mubr.f32.vlgmr.msra.gmra.mrb[0].mxu1 %v1305_v1  ;;  %1173 = vmatprep.subr.bf16.mxu0 %v1303_v0 }
  0x1e   :  { %1169 = vmatpush3.bf16.msra.mxu1 %v1344_v5  ;;  %1097 = vmatprep.mubr.msk.f32.mxu1 %vm1304_vm0, %v1305_v1 }
  0x1f   :  { %1170 = vmatprep.subr.bf16.mxu1 %v1303_v0 }
  0x22   :  { %1172 = vmatpush3.bf16.msra.mxu1 %v1353_v10 }
  0x23   :  { %1179 = vmatprep.subr.bf16.mxu1 %v1303_v0 }
  0xe9   :  { %v1066_v16 = vpop.f32.mrb[0].mxu0 }
  0xea   :  { %v1372_v17 = vadd.f32 %v1066_v16, %v39_v15  ;;  %v117_v18 = vpop.f32.mrb[1].mxu0 }
  0xeb   :  { %v1374_v19 = vadd.f32 %v117_v18, %v39_v15 }
  0xf0   :  { %v196_v20 = vpop.f32.mrb[0].mxu1 }
  0xf1   :  { %v200_v21 = vadd.f32 %v196_v20, %v1374_v19  ;;  %v1077_v22 = vpop.f32.mrb[1].mxu1 }
  0xf3   :  { %1212 = vtanh.f32 %v200_v21  ;;  %v1003_v24 = vmul.f32 -1.442695, %v200_v21 }
  0xf5   :  { %1214 = vpow2.f32 %v1003_v24 }
  0xfd   :  { %v1213_v23 = vpop.eup %1212 }
  0xfe   :  { %210 = vrot.lane.b32.xlu0 %v1213_v23, %s1306_s0 }
  0xff   :  { %v1215_v25 = vpop.eup %1214 }
 0x100   :  { %v204_v26 = vadd.f32 1.0, %v1215_v25 }
 0x102   :  { %1216 = vrcp.f32 %v204_v26 }
 0x10c   :  { %v1217_v27 = vpop.eup %1216 }
 0x10d   :  { %v208_v30 = vmul.f32 0.0, %v1217_v27 }
 0x170   :  { %v211_v28 = vpop.permute.xlu0 %210 }
 0x171   :  { %v213_v29 = vmul.f32 %v1217_v27, %v211_v28 }
 0x173   :  { %215 = vrot.lane.b32.xlu0 %v213_v29, %s1307_s29 }
 0x1e5   :  { %v216_v31 = vpop.permute.xlu0 %215 }
 0x1e6   :  { %v218_v32 = vadd.f32 %v216_v31, %v208_v30 }
 0x1e8   :  { %1218 = vtanh.f32 %v218_v32  ;;  %v312_v48 = vrot.slane %v218_v32, 6 }
 0x1f2   :  { %v1219_v33 = vpop.eup %1218 }
 0x1f3   :  { %221 = vrot.lane.b32.xlu1 %v1219_v33, %s1306_s0 }
 0x265   :  { %v222_v34 = vpop.permute.xlu1 %221 }
 0x266   :  { %v224_v35 = vmul.f32 %v1217_v27, %v222_v34 }
 0x268   :  { %226 = vrot.lane.b32.xlu1 %v224_v35, %s1307_s29 }
 0x2da   :  { %v227_v36 = vpop.permute.xlu1 %226 }
 0x2db   :  { %1087 = vmatmul.mubr.msk.f32.vlgmr.msra.gmra.mrb[2].mxu0 %vm126_vm3, %v227_v36 }
 0x2dc   :  { %1175 = vmatpush3.bf16.msra.mxu0 %v1344_v5  ;;  %1108 = vmatprep.mubr.msk.f32.mxu0 %vm1304_vm0, %v1305_v1 }
 0x2dd   :  { %1176 = vmatprep.subr.bf16.mxu0 %v1303_v0 }
 0x2e0   :  { %1178 = vmatpush3.bf16.msra.mxu0 %v1353_v10 }
 0x2e1   :  { %1185 = vmatprep.subr.bf16.mxu0 %v1303_v0 }
 0x3ae   :  { %v296_v37 = vpop.f32.mrb[2].mxu0 }
 0x3af   :  { %v301_v38 = vrot.slane %v296_v37, 6  ;;  %v1088_v39 = vpop.f32.mrb[3].mxu0 }
 0x3b1   :  { %v303_v40 = vadd.f32 %v301_v38, %v1374_v19 }
 0x3b3   :  { %1220 = vtanh.f32 %v303_v40  ;;  %v1005_v42 = vmul.f32 -1.442695, %v303_v40 }
 0x3b5   :  { %1222 = vpow2.f32 %v1005_v42 }
 0x3bd   :  { %v1221_v41 = vpop.eup %1220 }
 0x3be   :  { %316 = vrot.lane.b32.xlu0 %v1221_v41, %s1306_s0 }
 0x3bf   :  { %v1223_v43 = vpop.eup %1222 }
 0x3c0   :  { %v307_v44 = vadd.f32 1.0, %v1223_v43 }
 0x3c2   :  { %1224 = vrcp.f32 %v307_v44 }
 0x3cc   :  { %v1225_v45 = vpop.eup %1224 }
 0x3cd   :  { %v314_v49 = vmul.f32 %v1225_v45, %v312_v48 }
 0x430   :  { %v317_v46 = vpop.permute.xlu0 %316 }
 0x431   :  { %v319_v47 = vmul.f32 %v1225_v45, %v317_v46 }
 0x433   :  { %321 = vrot.lane.b32.xlu1 %v319_v47, %s1307_s29 }
 0x4a5   :  { %v322_v50 = vpop.permute.xlu1 %321 }
 0x4a6   :  { %v324_v51 = vadd.f32 %v322_v50, %v314_v49 }
 0x4a8   :  { %1226 = vtanh.f32 %v324_v51  ;;  %v419_v7 = vrot.slane %v324_v51, 6 }
 0x4b2   :  { %v1227_v52 = vpop.eup %1226 }
 0x4b3   :  { %327 = vrot.lane.b32.xlu0 %v1227_v52, %s1306_s0 }
 0x525   :  { %v328_v53 = vpop.permute.xlu0 %327 }
 0x526   :  { %v330_v54 = vmul.f32 %v1225_v45, %v328_v53 }
 0x528   :  { %v332_v55 = vrot.slane %v330_v54, 2 }
 0x52a   :  { %333 = vrot.lane.b32.xlu1 %v332_v55, %s1307_s29 }
 0x59c   :  { %v334_v56 = vpop.permute.xlu1 %333 }
 0x59d   :  { %1098 = vmatmul.mubr.msk.f32.vlgmr.msra.gmra.mrb[2].mxu1 %vm126_vm3, %v334_v56 }
 0x59e   :  { %1181 = vmatpush3.bf16.msra.mxu1 %v1344_v5  ;;  %1119 = vmatprep.mubr.msk.f32.mxu1 %vm1304_vm0, %v1305_v1 }
 0x59f   :  { %1182 = vmatprep.subr.bf16.mxu1 %v1303_v0 }
 0x5a2   :  { %1184 = vmatpush3.bf16.msra.mxu1 %v1353_v10 }
 0x5a3   :  { %1191 = vmatprep.subr.bf16.mxu1 %v1303_v0 }
 0x670   :  { %v403_v57 = vpop.f32.mrb[2].mxu1 }
 0x671   :  { %v408_v58 = vrot.slane %v403_v57, 4  ;;  %v1099_v59 = vpop.f32.mrb[3].mxu1 }
 0x673   :  { %v410_v60 = vadd.f32 %v408_v58, %v1374_v19 }
 0x675   :  { %1228 = vtanh.f32 %v410_v60  ;;  %v1007_v62 = vmul.f32 -1.442695, %v410_v60 }
 0x677   :  { %1230 = vpow2.f32 %v1007_v62 }
 0x67f   :  { %v1229_v61 = vpop.eup %1228 }
 0x680   :  { %423 = vrot.lane.b32.xlu0 %v1229_v61, %s1306_s0 }
 0x681   :  { %v1231_v63 = vpop.eup %1230 }
 0x682   :  { %v414_v2 = vadd.f32 1.0, %v1231_v63 }
 0x684   :  { %1232 = vrcp.f32 %v414_v2 }
 0x68e   :  { %v1233_v3 = vpop.eup %1232 }
 0x68f   :  { %v421_v8 = vmul.f32 %v1233_v3, %v419_v7 }
 0x6f2   :  { %v424_v4 = vpop.permute.xlu0 %423 }
 0x6f3   :  { %v426_v6 = vmul.f32 %v1233_v3, %v424_v4 }
 0x6f5   :  { %428 = vrot.lane.b32.xlu1 %v426_v6, %s1307_s29 }
 0x767   :  { %v429_v9 = vpop.permute.xlu1 %428 }
 0x768   :  { %v431_v11 = vadd.f32 %v429_v9, %v421_v8 }
 0x76a   :  { %1234 = vtanh.f32 %v431_v11  ;;  %v526_v30 = vrot.slane %v431_v11, 6 }
 0x774   :  { %v1235_v12 = vpop.eup %1234 }
 0x775   :  { %434 = vrot.lane.b32.xlu0 %v1235_v12, %s1306_s0 }
 0x7e7   :  { %v435_v13 = vpop.permute.xlu0 %434 }
 0x7e8   :  { %v437_v14 = vmul.f32 %v1233_v3, %v435_v13 }
 0x7ea   :  { %v439_v15 = vrot.slane %v437_v14, 4 }
 0x7ec   :  { %440 = vrot.lane.b32.xlu1 %v439_v15, %s1307_s29 }
 0x85e   :  { %v441_v16 = vpop.permute.xlu1 %440 }
 0x85f   :  { %1109 = vmatmul.mubr.msk.f32.vlgmr.msra.gmra.mrb[4].mxu0 %vm126_vm3, %v441_v16 }
 0x860   :  { %1187 = vmatpush3.bf16.msra.mxu0 %v1344_v5  ;;  %1130 = vmatprep.mubr.msk.f32.mxu0 %vm1304_vm0, %v1305_v1 }
 0x861   :  { %1188 = vmatprep.subr.bf16.mxu0 %v1303_v0 }
 0x864   :  { %1190 = vmatpush3.bf16.msra.mxu0 %v1353_v10 }
 0x865   :  { %1197 = vmatprep.subr.bf16.mxu0 %v1303_v0 }
 0x932   :  { %v510_v18 = vpop.f32.mrb[4].mxu0 }
 0x933   :  { %v515_v20 = vrot.slane %v510_v18, 2  ;;  %v1110_v21 = vpop.f32.mrb[5].mxu0 }
 0x935   :  { %v517_v22 = vadd.f32 %v515_v20, %v1374_v19 }
 0x937   :  { %1236 = vtanh.f32 %v517_v22  ;;  %v1009_v24 = vmul.f32 -1.442695, %v517_v22 }
 0x939   :  { %1238 = vpow2.f32 %v1009_v24 }
 0x941   :  { %v1237_v23 = vpop.eup %1236 }
 0x942   :  { %530 = vrot.lane.b32.xlu0 %v1237_v23, %s1306_s0 }
 0x943   :  { %v1239_v25 = vpop.eup %1238 }
 0x944   :  { %v521_v26 = vadd.f32 1.0, %v1239_v25 }
 0x946   :  { %1240 = vrcp.f32 %v521_v26 }
 0x950   :  { %v1241_v27 = vpop.eup %1240 }
 0x951   :  { %v528_v31 = vmul.f32 %v1241_v27, %v526_v30 }
 0x9b4   :  { %v531_v28 = vpop.permute.xlu0 %530 }
 0x9b5   :  { %v533_v29 = vmul.f32 %v1241_v27, %v531_v28 }
 0x9b7   :  { %535 = vrot.lane.b32.xlu1 %v533_v29, %s1307_s29 }
 0xa29   :  { %v536_v32 = vpop.permute.xlu1 %535 }
 0xa2a   :  { %v538_v33 = vadd.f32 %v536_v32, %v528_v31 }
 0xa2c   :  { %1242 = vtanh.f32 %v538_v33  ;;  %v630_v48 = vrot.slane %v538_v33, 6 }
 0xa36   :  { %v1243_v19 = vpop.eup %1242 }
 0xa37   :  { %541 = vrot.lane.b32.xlu0 %v1243_v19, %s1306_s0 }
 0xaa9   :  { %v542_v34 = vpop.permute.xlu0 %541 }
 0xaaa   :  { %v544_v35 = vmul.f32 %v1241_v27, %v542_v34 }
 0xaac   :  { %v546_v36 = vrot.slane %v544_v35, 6 }
 0xaae   :  { %547 = vrot.lane.b32.xlu1 %v546_v36, %s1307_s29 }
 0xb20   :  { %v548_v37 = vpop.permute.xlu1 %547 }
 0xb21   :  { %1120 = vmatmul.mubr.msk.f32.vlgmr.msra.gmra.mrb[4].mxu1 %vm126_vm3, %v548_v37 }
 0xb22   :  { %1193 = vmatpush3.bf16.msra.mxu1 %v1344_v5  ;;  %1141 = vmatprep.mubr.msk.f32.mxu1 %vm1304_vm0, %v1305_v1 }
 0xb23   :  { %1194 = vmatprep.subr.bf16.mxu1 %v1303_v0 }
 0xb26   :  { %1196 = vmatpush3.bf16.msra.mxu1 %v1353_v10 }
 0xbf4   :  { %v617_v38 = vpop.f32.mrb[4].mxu1 }
 0xbf5   :  { %v621_v39 = vadd.f32 %v617_v38, %v1372_v17  ;;  %v1121_v40 = vpop.f32.mrb[5].mxu1 }
 0xbf7   :  { %1244 = vtanh.f32 %v621_v39  ;;  %v1011_v42 = vmul.f32 -1.442695, %v621_v39 }
 0xbf9   :  { %1246 = vpow2.f32 %v1011_v42 }
 0xc01   :  { %v1245_v41 = vpop.eup %1244 }
 0xc02   :  { %634 = vrot.lane.b32.xlu0 %v1245_v41, %s1306_s0 }
 0xc03   :  { %v1247_v43 = vpop.eup %1246 }
 0xc04   :  { %v625_v44 = vadd.f32 1.0, %v1247_v43 }
 0xc06   :  { %1248 = vrcp.f32 %v625_v44  ;;  %v1018_v44 = vld [vmem:[%s1459_s2] ss:$0 sm:$0xff] }
 0xc10   :  { %v1249_v45 = vpop.eup %1248 }
 0xc11   :  { %v632_v49 = vmul.f32 %v1249_v45, %v630_v48 }
 0xc74   :  { %v635_v46 = vpop.permute.xlu0 %634 }
 0xc75   :  { %v637_v47 = vmul.f32 %v1249_v45, %v635_v46 }
 0xc77   :  { %639 = vrot.lane.b32.xlu1 %v637_v47, %s1307_s29 }
 0xce9   :  { %v640_v50 = vpop.permute.xlu1 %639 }
 0xcea   :  { %v642_v51 = vadd.f32 %v640_v50, %v632_v49 }
 0xcec   :  { %1250 = vtanh.f32 %v642_v51 }
 0xcf6   :  { %v1251_v52 = vpop.eup %1250 }
 0xcf7   :  { %645 = vrot.lane.b32.xlu0 %v1251_v52, %s1306_s0 }
 0xd69   :  { %v646_v53 = vpop.permute.xlu0 %645 }
 0xd6a   :  { %v648_v54 = vmul.f32 %v1249_v45, %v646_v53 }
 0xd6c   :  { %650 = vrot.lane.b32.xlu1 %v648_v54, %s1307_s29 }
 0xdde   :  { %v651_v55 = vpop.permute.xlu1 %650 }
 0xddf   :  { %1131 = vmatmul.mubr.msk.f32.vlgmr.msra.gmra.mrb[6].mxu0 %vm126_vm3, %v651_v55 }
 0xde0   :  { %1199 = vmatpush3.bf16.msra.mxu0 %v1344_v5  ;;  %1152 = vmatprep.mubr.msk.f32.mxu0 %vm1304_vm0, %v1305_v1 }
 0xde1   :  { %1200 = vmatprep.subr.bf16.mxu0 %v1303_v0  ;;  %v736_v0 = vrot.slane %v642_v51, 6 }
 0xde4   :  { %1202 = vmatpush3.bf16.msra.mxu0 %v1353_v10 }
 0xeb2   :  { %v720_v56 = vpop.f32.mrb[6].mxu0 }
 0xeb3   :  { %v725_v57 = vrot.slane %v720_v56, 6  ;;  %v1132_v58 = vpop.f32.mrb[7].mxu0 }
 0xeb5   :  { %v727_v59 = vadd.f32 %v725_v57, %v1372_v17 }
 0xeb7   :  { %1252 = vtanh.f32 %v727_v59  ;;  %v1013_v61 = vmul.f32 -1.442695, %v727_v59 }
 0xeb9   :  { %1254 = vpow2.f32 %v1013_v61 }
 0xec1   :  { %v1253_v60 = vpop.eup %1252 }
 0xec2   :  { %740 = vrot.lane.b32.xlu0 %v1253_v60, %s1306_s0 }
 0xec3   :  { %v1255_v62 = vpop.eup %1254 }
 0xec4   :  { %v731_v5 = vadd.f32 1.0, %v1255_v62 }
 0xec6   :  { %1256 = vrcp.f32 %v731_v5 }
 0xed0   :  { %v1257_v63 = vpop.eup %1256 }
 0xed1   :  { %v738_v10 = vmul.f32 %v1257_v63, %v736_v0 }
 0xf34   :  { %v741_v1 = vpop.permute.xlu0 %740 }
 0xf35   :  { %v743_v2 = vmul.f32 %v1257_v63, %v741_v1 }
 0xf37   :  { %745 = vrot.lane.b32.xlu1 %v743_v2, %s1307_s29 }
 0xfa9   :  { %v746_v3 = vpop.permute.xlu1 %745 }
 0xfaa   :  { %v748_v4 = vadd.f32 %v746_v3, %v738_v10 }
 0xfac   :  { %1258 = vtanh.f32 %v748_v4  ;;  %v843_v25 = vrot.slane %v748_v4, 6 }
 0xfb6   :  { %v1259_v6 = vpop.eup %1258 }
 0xfb7   :  { %751 = vrot.lane.b32.xlu0 %v1259_v6, %s1306_s0 }
0x1029   :  { %v752_v7 = vpop.permute.xlu0 %751 }
0x102a   :  { %v754_v8 = vmul.f32 %v1257_v63, %v752_v7 }
0x102c   :  { %v756_v9 = vrot.slane %v754_v8, 2 }
0x102e   :  { %757 = vrot.lane.b32.xlu1 %v756_v9, %s1307_s29 }
0x10a0   :  { %v758_v11 = vpop.permute.xlu1 %757 }
0x10a1   :  { %1142 = vmatmul.mubr.msk.f32.vlgmr.msra.gmra.mrb[6].mxu1 %vm126_vm3, %v758_v11 }
0x1174   :  { %v827_v12 = vpop.f32.mrb[6].mxu1 }
0x1175   :  { %v832_v13 = vrot.slane %v827_v12, 4  ;;  %v1143_v14 = vpop.f32.mrb[7].mxu1 }
0x1177   :  { %v834_v15 = vadd.f32 %v832_v13, %v1372_v17 }
0x1179   :  { %1260 = vtanh.f32 %v834_v15  ;;  %v1015_v18 = vmul.f32 -1.442695, %v834_v15 }
0x117b   :  { %1262 = vpow2.f32 %v1015_v18 }
0x1183   :  { %v1261_v16 = vpop.eup %1260 }
0x1184   :  { %847 = vrot.lane.b32.xlu0 %v1261_v16, %s1306_s0 }
0x1185   :  { %v1263_v20 = vpop.eup %1262 }
0x1186   :  { %v838_v21 = vadd.f32 1.0, %v1263_v20 }
0x1188   :  { %1264 = vrcp.f32 %v838_v21 }
0x1192   :  { %v1265_v22 = vpop.eup %1264 }
0x1193   :  { %v845_v26 = vmul.f32 %v1265_v22, %v843_v25 }
0x11f6   :  { %v848_v23 = vpop.permute.xlu0 %847 }
0x11f7   :  { %v850_v24 = vmul.f32 %v1265_v22, %v848_v23 }
0x11f9   :  { %852 = vrot.lane.b32.xlu1 %v850_v24, %s1307_s29 }
0x126b   :  { %v853_v27 = vpop.permute.xlu1 %852 }
0x126c   :  { %v855_v28 = vadd.f32 %v853_v27, %v845_v26 }
0x126e   :  { %1266 = vtanh.f32 %v855_v28 }
0x1278   :  { %v1267_v29 = vpop.eup %1266 }
0x1279   :  { %858 = vrot.lane.b32.xlu0 %v1267_v29, %s1306_s0 }
0x12eb   :  { %v859_v30 = vpop.permute.xlu0 %858 }
0x12ec   :  { %v861_v31 = vmul.f32 %v1265_v22, %v859_v30 }
0x12ee   :  { %v863_v32 = vrot.slane %v861_v31, 4 }
0x12f0   :  { %864 = vrot.lane.b32.xlu1 %v863_v32, %s1307_s29 }
0x1362   :  { %v865_v33 = vpop.permute.xlu1 %864 }
0x1363   :  { %1153 = vmatmul.mubr.msk.f32.vlgmr.msra.gmra.mrb[8].mxu0 %vm126_vm3, %v865_v33 }
0x1436   :  { %v934_v19 = vpop.f32.mrb[8].mxu0 }
0x1437   :  { %v939_v34 = vrot.slane %v934_v19, 2  ;;  %v1154_v35 = vpop.f32.mrb[9].mxu0 }
0x1439   :  { %v941_v36 = vadd.f32 %v939_v34, %v1372_v17  ;;  %v950_v17 = vrot.slane %v855_v28, 6 }
0x143b   :  { %1268 = vtanh.f32 %v941_v36  ;;  %v1017_v38 = vmul.f32 -1.442695, %v941_v36 }
0x143d   :  { %1270 = vpow2.f32 %v1017_v38 }
0x1445   :  { %v1269_v37 = vpop.eup %1268 }
0x1446   :  { %954 = vrot.lane.b32.xlu0 %v1269_v37, %s1306_s0 }
0x1447   :  { %v1271_v39 = vpop.eup %1270 }
0x1448   :  { %v945_v40 = vadd.f32 1.0, %v1271_v39 }
0x144a   :  { %1272 = vrcp.f32 %v945_v40 }
0x1454   :  { %v1273_v41 = vpop.eup %1272 }
0x1455   :  { %v952_v45 = vmul.f32 %v1273_v41, %v950_v17 }
0x14b8   :  { %v955_v42 = vpop.permute.xlu0 %954 }
0x14b9   :  { %v957_v43 = vmul.f32 %v1273_v41, %v955_v42 }
0x14bb   :  { %959 = vrot.lane.b32.xlu1 %v957_v43, %s1307_s29 }
0x14bf   :  { %975 = vrot.lane.b32.xlu1 %v1018_v44, %s1308_s5 }
0x152d   :  { %v960_v46 = vpop.permute.xlu1 %959 }
0x152e   :  { %v962_v47 = vadd.f32 %v960_v46, %v952_v45 }
0x1530   :  { %1274 = vtanh.f32 %v962_v47 }
0x1531   :  { %v976_v50 = vpop.permute.xlu1 %975 }
0x153a   :  { %v1275_v48 = vpop.eup %1274 }
0x153b   :  { %965 = vrot.lane.b32.xlu0 %v1275_v48, %s1306_s0 }
0x15ad   :  { %v966_v49 = vpop.permute.xlu0 %965 }
0x15ae   :  { %v968_v51 = vmul.f32 %v1273_v41, %v966_v49 }
0x15b0   :  { %v978_v52 = vmul.f32 %v976_v50, %v968_v51 }
0x15b2   :  { %980 = vrot.lane.b32.xlu0 %v978_v52, %s1307_s29 }
0x1624   :  { %v981_v53 = vpop.permute.xlu0 %980 }
0x1625   :  { %v984_v54 = vsel %vm983_vm4, %v981_v53, 0.0 }
0x1626   :  { %985 = vadd.xlane.f32.xlu1 %v984_v54 }
0x16b3   :  { %v986_v55 = vpop.xlane.xlu1 %985 }
0x16b4   :  { %v988_v56 = vadd.f32 %v1018_v44, %v986_v55 }
0x16b6   :  { %990 = vrot.lane.b32.xlu0 %v988_v56, %s1308_s5 }
0x1728   :  { %v991_v57 = vpop.permute.xlu0 %990 }
0x1729   :  { %994 = vst.msk [vmem:[%s1460_s3 - $0x6] sm:$0xc0] %vm993_vm5, %v991_v57 }
0x172a   :  { %999 = vsyncpa [#allocation3], 1 }

</bundles_post_ra>
